<compile_context>
chip_gen: v5e
topology: v5e:2x2
jax: 0.10.0
libtpu: 0.0.40
codegen_flags: <defaults>
</compile_context>

<pallas_src>
import jax
import jax.numpy as jnp
import numpy as np
from jax import lax
from jax.experimental import pallas as pl
from jax.experimental.pallas import tpu as pltpu

NEG_INF = float(-1e30)   # running-max init
KEY_PAD_BIAS = -1e9      # energy added to padded key columns (via the aug channel)


def _round_up(x, m):
    return (x + m - 1) // m * m


def _pam_ctx_kernel(q_ref, k_ref, xk_ref, ctx_ref, m_sc, l_sc, acc_sc):
    """Flash-style online-softmax attention; outputs the unprojected context ctx."""
    ki = pl.program_id(2)
    nk = pl.num_programs(2)

    @pl.when(ki == 0)
    def _init():
        m_sc[...] = jnp.full_like(m_sc, NEG_INF)
        l_sc[...] = jnp.zeros_like(l_sc)
        acc_sc[...] = jnp.zeros_like(acc_sc)

    # energy^T[j, i] = k_j . q_i  (contract channel axis 0 of both -> key-major layout,
    # so softmax stats broadcast over lanes without any transpose).
    energy = lax.dot_general(k_ref[...], q_ref[...], (((0,), (0,)), ((), ())),
                             preferred_element_type=jnp.float32)        # (TK, TQ) f32

    # Online softmax over the key axis (axis 0); stats in f32.
    m_prev = m_sc[...]                                                  # (1, TQ)
    m_new = jnp.maximum(m_prev, jnp.max(energy, axis=0, keepdims=True))
    alpha = jnp.exp(m_prev - m_new)                                     # (1, TQ)
    p = jnp.exp(energy - m_new)                                         # (TK, TQ)
    l_sc[...] = alpha * l_sc[...] + jnp.sum(p, axis=0, keepdims=True)
    # Context accumulated in x-space: acc[:, i] += sum_j x_j * p[j, i]
    acc_sc[...] = alpha * acc_sc[...] + jnp.dot(
        xk_ref[...], p.astype(jnp.bfloat16), preferred_element_type=jnp.float32)
    m_sc[...] = m_new

    @pl.when(ki == nk - 1)
    def _finalize():
        ctx = acc_sc[...] * pl.reciprocal(l_sc[...], approx=True)       # (C, TQ)
        ctx_ref[...] = ctx.astype(ctx_ref.dtype)


def _pick_tiles(n128, tq_target=512, tk_target=256):
    tq = min(tq_target, n128)
    if tq % tk_target == 0:
        tk = tk_target
    else:
        tk = min(tq, 128)
    return tq, tk


def pam_forward(x, wq, bq, wk, bk, wv, bv, gamma):
    """x: (B, C, H, W) float32. Returns (B, C, H, W). Matches PAM_Module.forward."""
    B, C, H, W = x.shape
    N = H * W
    C8 = wq.shape[0]

    n128 = _round_up(N, 128)
    TQ, TK = _pick_tiles(n128)
    n_pad = _round_up(N, TQ)          # TK divides TQ divides n_pad
    nq = n_pad // TQ
    nk = n_pad // TK

    x_flat = x.reshape(B, C, N).astype(jnp.float32)
    x_pad = x_flat
    if n_pad != N:
        x_pad = jnp.pad(x_flat, ((0, 0), (0, 0), (0, n_pad - N)))

    # --- q/k 1x1 convs hoisted to the wrapper (one XLA GEMM each over all of N) ---
    q = jnp.einsum('oc,bcn->bon', wq, x_pad) + bq[None, :, None]        # (B, C8, n_pad)
    k = jnp.einsum('oc,bcn->bon', wk, x_pad) + bk[None, :, None]        # (B, C8, n_pad)

    # Augmented "bias" channel: padded key columns get energy += -1e9 for free inside
    # the energy matmul (no in-kernel masking), then zero-pad channels to a multiple
    # of 8 for clean sublane layout.
    rows_q, rows_k = [q], [k]
    c_aug = C8
    if n_pad != N:
        key_bias = jnp.where(jnp.arange(n_pad) < N, 0.0, KEY_PAD_BIAS).astype(jnp.float32)
        rows_q.append(jnp.ones((B, 1, n_pad), jnp.float32))
        rows_k.append(jnp.broadcast_to(key_bias[None, None, :], (B, 1, n_pad)))
        c_aug += 1
    C8p = _round_up(c_aug, 8)
    if C8p != c_aug:
        zpad = jnp.zeros((B, C8p - c_aug, n_pad), jnp.float32)
        rows_q.append(zpad)
        rows_k.append(zpad)
    q_bf = jnp.concatenate(rows_q, axis=1).astype(jnp.bfloat16)         # (B, C8p, n_pad)
    k_bf = jnp.concatenate(rows_k, axis=1).astype(jnp.bfloat16)         # (B, C8p, n_pad)
    xk_bf = x_pad.astype(jnp.bfloat16)                                  # (B, C,   n_pad)

    # --- explicit VMEM budget (double-buffered inputs/outputs + scratch + temps) ---
    bf16b, f32b = 2, 4
    est = (2 * (C8p * (TQ + TK) + C * TK) * bf16b      # bf16 input blocks (x2 buffers)
           + 2 * C * TQ * f32b                          # ctx output block (x2 buffers)
           + (C * TQ + 2 * TQ) * f32b                   # scratch: acc, m, l
           + 2 * TK * TQ * f32b + TK * TQ * bf16b)      # energy / p temporaries
    vmem_limit = int(min(max(int(1.35 * est), 8 << 20), 48 << 20))

    ctx = pl.pallas_call(
        _pam_ctx_kernel,
        out_shape=jax.ShapeDtypeStruct((B, C, n_pad), jnp.float32),
        grid_spec=pltpu.PrefetchScalarGridSpec(
            num_scalar_prefetch=0,
            grid=(B, nq, nk),
            in_specs=[
                pl.BlockSpec((pl.Squeezed(), C8p, TQ), lambda b, qi, ki: (b, 0, qi)),  # q tile
                pl.BlockSpec((pl.Squeezed(), C8p, TK), lambda b, qi, ki: (b, 0, ki)),  # k tile
                pl.BlockSpec((pl.Squeezed(), C, TK), lambda b, qi, ki: (b, 0, ki)),    # x key tile
            ],
            out_specs=pl.BlockSpec((pl.Squeezed(), C, TQ), lambda b, qi, ki: (b, 0, qi)),
            scratch_shapes=[
                pltpu.VMEM((1, TQ), jnp.float32),    # running max
                pltpu.VMEM((1, TQ), jnp.float32),    # running denominator
                pltpu.VMEM((C, TQ), jnp.float32),    # unnormalized context accumulator
            ],
        ),
        compiler_params=pltpu.CompilerParams(
            dimension_semantics=("parallel", "parallel", "arbitrary"),
            vmem_limit_bytes=vmem_limit,
        ),
    )(q_bf, k_bf, xk_bf)

    ctx = ctx[:, :, :N]
    # Value projection + gamma + residual in the wrapper (exact: attention rows sum
    # to 1, so Wv (X attn^T) + bv == (Wv X + bv) attn^T).
    out = jnp.einsum('oc,bcn->bon', wv, ctx) + bv[None, :, None]
    out = jnp.reshape(gamma, ()) * out + x_flat
    return out.reshape(B, C, H, W)


def pam_ref(x, wq, bq, wk, bk, wv, bv, gamma):
    """Pure-JAX reference mirroring the PyTorch forward (including bk)."""
    B, C, H, W = x.shape
    N = H * W
    xf = x.reshape(B, C, N)
    q = jnp.einsum('oc,bcn->bon', wq, xf) + bq[None, :, None]
    k = jnp.einsum('oc,bcn->bon', wk, xf) + bk[None, :, None]
    v = jnp.einsum('oc,bcn->bon', wv, xf) + bv[None, :, None]
    energy = jnp.einsum('bci,bcj->bij', q, k)          # (B, N, N)
    attn = jax.nn.softmax(energy, axis=-1)
    out = jnp.einsum('bcj,bij->bci', v, attn)          # (B, C, N)
    out = jnp.reshape(gamma, ()) * out + xf
    return out.reshape(B, C, H, W)


def _make_params(key, C):
    C8 = max(C // 8, 1)
    k1, k2, k3, k4, k5, k6 = jax.random.split(key, 6)
    wq = jax.random.normal(k1, (C8, C), dtype=jnp.float32) * 0.1
    bq = jax.random.normal(k2, (C8,), dtype=jnp.float32) * 0.1
    wk = jax.random.normal(k3, (C8, C), dtype=jnp.float32) * 0.1
    bk = jax.random.normal(k4, (C8,), dtype=jnp.float32) * 0.1
    wv = jax.random.normal(k5, (C, C), dtype=jnp.float32) * 0.1
    bv = jax.random.normal(k6, (C,), dtype=jnp.float32) * 0.1
    return wq, bq, wk, bk, wv, bv


if __name__ == "__main__":
    key = jax.random.PRNGKey(0)
    kx1, kp1, kx2, kp2 = jax.random.split(key, 4)

    # Case 1: small image, single tile; gamma = 0 (module init) and non-trivial gamma.
    B, C, H, W = 2, 16, 8, 8
    x = jax.random.normal(kx1, (B, C, H, W), dtype=jnp.float32)
    wq, bq, wk, bk, wv, bv = _make_params(kp1, C)

    gamma0 = jnp.zeros((1,), dtype=jnp.float32)
    out0 = pam_forward(x, wq, bq, wk, bk, wv, bv, gamma0)
    jax.block_until_ready(out0)
    np.testing.assert_allclose(
        np.asarray(out0), np.asarray(pam_ref(x, wq, bq, wk, bk, wv, bv, gamma0)),
        rtol=2e-2, atol=2e-2)

    gamma1 = jnp.full((1,), 0.5, dtype=jnp.float32)
    out1 = pam_forward(x, wq, bq, wk, bk, wv, bv, gamma1)
    jax.block_until_ready(out1)
    np.testing.assert_allclose(
        np.asarray(out1), np.asarray(pam_ref(x, wq, bq, wk, bk, wv, bv, gamma1)),
        rtol=2e-2, atol=2e-2)

    # Case 2: multiple query/key tiles + padding (N = 900 -> padded to 1024,
    # TQ = 512 / TK = 256 => nq = 2, nk = 4) exercising online-softmax carry and the
    # augmented-channel key masking.
    B2, C2, H2, W2 = 1, 32, 30, 30
    x2 = jax.random.normal(kx2, (B2, C2, H2, W2), dtype=jnp.float32)
    wq2, bq2, wk2, bk2, wv2, bv2 = _make_params(kp2, C2)
    gamma2 = jnp.full((1,), 0.7, dtype=jnp.float32)
    out2 = pam_forward(x2, wq2, bq2, wk2, bk2, wv2, bv2, gamma2)
    jax.block_until_ready(out2)
    np.testing.assert_allclose(
        np.asarray(out2), np.asarray(pam_ref(x2, wq2, bq2, wk2, bk2, wv2, bv2, gamma2)),
        rtol=2e-2, atol=2e-2)

    print("KERNEL_OK")
</pallas_src>

<mosaic_0001>
module attributes {stable_mosaic.version = 11 : i64} {
  func.func @_pam_ctx_kernel(%arg0: i32, %arg1: i32, %arg2: i32, %arg3: memref<1x8x128xbf16, #tpu.memory_space<vmem>>, %arg4: memref<1x8x128xbf16, #tpu.memory_space<vmem>>, %arg5: memref<1x16x128xbf16, #tpu.memory_space<vmem>>, %arg6: memref<1x16x128xf32, #tpu.memory_space<vmem>>, %arg7: memref<1x128xf32, #tpu.memory_space<vmem>>, %arg8: memref<1x128xf32, #tpu.memory_space<vmem>>, %arg9: memref<16x128xf32, #tpu.memory_space<vmem>>) attributes {dimension_semantics = [#tpu.dimension_semantics<parallel>, #tpu.dimension_semantics<parallel>, #tpu.dimension_semantics<arbitrary>], iteration_bounds = array<i64: 2, 1, 1>, scalar_prefetch = 0 : i64, scratch_operands = 3 : i64, tpu.core_type = #tpu.core_type<tc>, window_params = [{transform_indices = @transform_0, window_bounds = array<i64: 1, 8, 128>}, {transform_indices = @transform_1, window_bounds = array<i64: 1, 8, 128>}, {transform_indices = @transform_2, window_bounds = array<i64: 1, 16, 128>}, {transform_indices = @transform_3, window_bounds = array<i64: 1, 16, 128>}]} {
    %c0_i32 = arith.constant 0 : i32
    %0 = arith.cmpi eq, %arg2, %c0_i32 : i32
    %1 = arith.extui %0 : i1 to i32
    %c0_i32_0 = arith.constant 0 : i32
    %2 = arith.cmpi ne, %1, %c0_i32_0 : i32
    scf.if %2 {
      %cst_26 = arith.constant -1.000000e+30 : f32
      %36 = vector.broadcast %cst_26 : f32 to vector<1x128xf32>
      %c0_27 = arith.constant 0 : index
      %c0_28 = arith.constant 0 : index
      %37 = vector.load %arg7[%c0_27, %c0_28] : memref<1x128xf32, #tpu.memory_space<vmem>>, vector<1x128xf32>
      tpu.vector_store %arg7[%c0_27, %c0_28], %36 {strides = array<i32>} : memref<1x128xf32, #tpu.memory_space<vmem>>, vector<1x128xf32>,
      %cst_29 = arith.constant 0.000000e+00 : f32
      %38 = vector.broadcast %cst_29 : f32 to vector<1x128xf32>
      %c0_30 = arith.constant 0 : index
      %c0_31 = arith.constant 0 : index
      %39 = vector.load %arg8[%c0_30, %c0_31] : memref<1x128xf32, #tpu.memory_space<vmem>>, vector<1x128xf32>
      tpu.vector_store %arg8[%c0_30, %c0_31], %38 {strides = array<i32>} : memref<1x128xf32, #tpu.memory_space<vmem>>, vector<1x128xf32>,
      %cst_32 = arith.constant 0.000000e+00 : f32
      %40 = vector.broadcast %cst_32 : f32 to vector<16x128xf32>
      %c0_33 = arith.constant 0 : index
      %c0_34 = arith.constant 0 : index
      %41 = vector.load %arg9[%c0_33, %c0_34] : memref<16x128xf32, #tpu.memory_space<vmem>>, vector<16x128xf32>
      tpu.vector_store %arg9[%c0_33, %c0_34], %40 {strides = array<i32>} : memref<16x128xf32, #tpu.memory_space<vmem>>, vector<16x128xf32>,
    } else {
    }
    %c0 = arith.constant 0 : index
    %c0_1 = arith.constant 0 : index
    %c0_2 = arith.constant 0 : index
    %3 = vector.load %arg4[%c0, %c0_1, %c0_2] : memref<1x8x128xbf16, #tpu.memory_space<vmem>>, vector<1x8x128xbf16>
    %4 = vector.shape_cast %3 : vector<1x8x128xbf16> to vector<8x128xbf16>
    %c0_3 = arith.constant 0 : index
    %c0_4 = arith.constant 0 : index
    %c0_5 = arith.constant 0 : index
    %5 = vector.load %arg3[%c0_3, %c0_4, %c0_5] : memref<1x8x128xbf16, #tpu.memory_space<vmem>>, vector<1x8x128xbf16>
    %6 = vector.shape_cast %5 : vector<1x8x128xbf16> to vector<8x128xbf16>
    %cst = arith.constant dense<0.000000e+00> : vector<128x128xf32>
    %7 = tpu.matmul %4, %6, %cst {dimension_numbers = #tpu.dot_dimension_numbers<[0], [0], [1], [1], [0, 1, 1, 1], [], []>} : vector<8x128xbf16>, vector<8x128xbf16>, vector<128x128xf32> -> vector<128x128xf32>
    %c0_6 = arith.constant 0 : index
    %c0_7 = arith.constant 0 : index
    %8 = vector.load %arg7[%c0_6, %c0_7] : memref<1x128xf32, #tpu.memory_space<vmem>>, vector<1x128xf32>
    %cst_8 = arith.constant dense<0xFF800000> : vector<128xf32>
    %9 = vector.multi_reduction <maximumf>, %7, %cst_8 [0] : vector<128x128xf32> to vector<128xf32>
    %10 = vector.shape_cast %9 : vector<128xf32> to vector<1x128xf32>
    %11 = arith.maximumf %8, %10 : vector<1x128xf32>
    %12 = arith.subf %8, %11 : vector<1x128xf32>
    %13 = math.exp %12 : vector<1x128xf32>
    %14 = vector.broadcast %11 : vector<1x128xf32> to vector<128x128xf32>
    %15 = arith.subf %7, %14 : vector<128x128xf32>
    %16 = math.exp %15 : vector<128x128xf32>
    %c0_9 = arith.constant 0 : index
    %c0_10 = arith.constant 0 : index
    %17 = vector.load %arg8[%c0_9, %c0_10] : memref<1x128xf32, #tpu.memory_space<vmem>>, vector<1x128xf32>
    %18 = arith.mulf %13, %17 : vector<1x128xf32>
    %cst_11 = arith.constant dense<0.000000e+00> : vector<128xf32>
    %19 = vector.multi_reduction <add>, %16, %cst_11 [0] : vector<128x128xf32> to vector<128xf32>
    %20 = vector.shape_cast %19 : vector<128xf32> to vector<1x128xf32>
    %21 = arith.addf %18, %20 : vector<1x128xf32>
    %c0_12 = arith.constant 0 : index
    %c0_13 = arith.constant 0 : index
    %22 = vector.load %arg8[%c0_12, %c0_13] : memref<1x128xf32, #tpu.memory_space<vmem>>, vector<1x128xf32>
    tpu.vector_store %arg8[%c0_12, %c0_13], %21 {strides = array<i32>} : memref<1x128xf32, #tpu.memory_space<vmem>>, vector<1x128xf32>,
    %c0_14 = arith.constant 0 : index
    %c0_15 = arith.constant 0 : index
    %23 = vector.load %arg9[%c0_14, %c0_15] : memref<16x128xf32, #tpu.memory_space<vmem>>, vector<16x128xf32>
    %24 = vector.broadcast %13 : vector<1x128xf32> to vector<16x128xf32>
    %25 = arith.mulf %24, %23 : vector<16x128xf32>
    %c0_16 = arith.constant 0 : index
    %c0_17 = arith.constant 0 : index
    %c0_18 = arith.constant 0 : index
    %26 = vector.load %arg5[%c0_16, %c0_17, %c0_18] : memref<1x16x128xbf16, #tpu.memory_space<vmem>>, vector<1x16x128xbf16>
    %27 = vector.shape_cast %26 : vector<1x16x128xbf16> to vector<16x128xbf16>
    %28 = arith.truncf %16 : vector<128x128xf32> to vector<128x128xbf16>
    %cst_19 = arith.constant dense<0.000000e+00> : vector<16x128xf32>
    %29 = tpu.matmul %27, %28, %cst_19 {dimension_numbers = #tpu.dot_dimension_numbers<[1], [0], [0], [1], [0, 0, 1, 1], [], []>} : vector<16x128xbf16>, vector<128x128xbf16>, vector<16x128xf32> -> vector<16x128xf32>
    %30 = arith.addf %25, %29 : vector<16x128xf32>
    %c0_20 = arith.constant 0 : index
    %c0_21 = arith.constant 0 : index
    %31 = vector.load %arg9[%c0_20, %c0_21] : memref<16x128xf32, #tpu.memory_space<vmem>>, vector<16x128xf32>
    tpu.vector_store %arg9[%c0_20, %c0_21], %30 {strides = array<i32>} : memref<16x128xf32, #tpu.memory_space<vmem>>, vector<16x128xf32>,
    %c0_22 = arith.constant 0 : index
    %c0_23 = arith.constant 0 : index
    %32 = vector.load %arg7[%c0_22, %c0_23] : memref<1x128xf32, #tpu.memory_space<vmem>>, vector<1x128xf32>
    tpu.vector_store %arg7[%c0_22, %c0_23], %11 {strides = array<i32>} : memref<1x128xf32, #tpu.memory_space<vmem>>, vector<1x128xf32>,
    %c0_i32_24 = arith.constant 0 : i32
    %33 = arith.cmpi eq, %arg2, %c0_i32_24 : i32
    %34 = arith.extui %33 : i1 to i32
    %c0_i32_25 = arith.constant 0 : i32
    %35 = arith.cmpi ne, %34, %c0_i32_25 : i32
    scf.if %35 {
      %c0_26 = arith.constant 0 : index
      %c0_27 = arith.constant 0 : index
      %36 = vector.load %arg9[%c0_26, %c0_27] : memref<16x128xf32, #tpu.memory_space<vmem>>, vector<16x128xf32>
      %c0_28 = arith.constant 0 : index
      %c0_29 = arith.constant 0 : index
      %37 = vector.load %arg8[%c0_28, %c0_29] : memref<1x128xf32, #tpu.memory_space<vmem>>, vector<1x128xf32>
      %38 = tpu.reciprocal %37 {approx = true} : vector<1x128xf32> -> vector<1x128xf32>
      %39 = vector.broadcast %38 : vector<1x128xf32> to vector<16x128xf32>
      %40 = arith.mulf %36, %39 : vector<16x128xf32>
      %c0_30 = arith.constant 0 : index
      %c0_31 = arith.constant 0 : index
      %c0_32 = arith.constant 0 : index
      %41 = vector.load %arg6[%c0_30, %c0_31, %c0_32] : memref<1x16x128xf32, #tpu.memory_space<vmem>>, vector<1x16x128xf32>
      %42 = vector.shape_cast %41 : vector<1x16x128xf32> to vector<16x128xf32>
      %43 = vector.shape_cast %40 : vector<16x128xf32> to vector<1x16x128xf32>
      tpu.vector_store %arg6[%c0_30, %c0_31, %c0_32], %43 {strides = array<i32>} : memref<1x16x128xf32, #tpu.memory_space<vmem>>, vector<1x16x128xf32>,
    } else {
    }
    return
  }
  func.func @transform_0(%arg0: i32, %arg1: i32, %arg2: i32) -> (i32, i32, i32) {
    %c0_i32 = arith.constant 0 : i32
    %c0_i32_0 = arith.constant 0 : i32
    return %arg0, %c0_i32, %arg1 : i32, i32, i32
  }
  func.func @transform_1(%arg0: i32, %arg1: i32, %arg2: i32) -> (i32, i32, i32) {
    %c0_i32 = arith.constant 0 : i32
    %c0_i32_0 = arith.constant 0 : i32
    return %arg0, %c0_i32, %arg2 : i32, i32, i32
  }
  func.func @transform_2(%arg0: i32, %arg1: i32, %arg2: i32) -> (i32, i32, i32) {
    %c0_i32 = arith.constant 0 : i32
    %c0_i32_0 = arith.constant 0 : i32
    return %arg0, %c0_i32, %arg2 : i32, i32, i32
  }
  func.func @transform_3(%arg0: i32, %arg1: i32, %arg2: i32) -> (i32, i32, i32) {
    %c0_i32 = arith.constant 0 : i32
    %c0_i32_0 = arith.constant 0 : i32
    return %arg0, %c0_i32, %arg1 : i32, i32, i32
  }
}

</mosaic_0001>

<bundles_post_ra>
// kernel: tpu_custom_call.1
= control target key start
LH: loop header
LB: loop body
LE: loop exit
PB: predicated region body
PF: predicated region fallthrough
CT: control target
= control target key end

     0   :  { %s1295_s0 = inlined_call_operand.hbm [shape: bf16[2,8,128], index: 0, kind: input, shape index: {}]   ;;  %s1296_s1 = inlined_call_operand.hbm [shape: bf16[2,8,128], index: 1, kind: input, shape index: {}]   ;;  %s1297_s2 = inlined_call_operand.hbm [shape: bf16[2,16,128], index: 2, kind: input, shape index: {}]   ;;  %s1298_s3 = inlined_call_operand.hbm [shape: f32[2,16,128], index: 3, kind: output, shape index: {}]  }
   0x1   :  { %1304 = sst [smem:[#allocation20_spill]] %s1296_s1 }
   0x2   :  { %8 = vsyncpa [#allocation6], 0 }
   0x3   :  { %10 = vsyncpa [#allocation6 + $0x1], 0 }
   0x4   :  { %11 = vsyncpa [#allocation9], 0 }
   0x5   :  { %13 = vsyncpa [#allocation9 + $0x1], 0 }
   0x6   :  { %14 = vsyncpa [#allocation7], 0 }
   0x7   :  { %16 = vsyncpa [#allocation7 + $0x1], 0  ;;  %s1066_s12 = smov 0   ;;  %s1068_s13 = smov 0  }
   0x8   :  { %s1070_s14 = smov 0   ;;  %s1072_s15 = smov 0  }
   0x9   :  { %s1074_s16 = smov 0   ;;  %s1076_s17 = smov 0  }
   0xa LB: > { %1305 = sst [smem:[#allocation15_spill]] %s1026_s14  ;;  %s1097_s18 = sadd.s32 4294967295, %s1038_s17   ;;  %s1038_s17 = sphi %s1076_s17, %s22_s17   ;;  %s1034_s16 = sphi %s1074_s16, %s1325_s16   ;;  %s1030_s15 = sphi %s1072_s15, %s1324_s15   ;;  %s1026_s14 = sphi %s1070_s14, %s1320_s14   ;;  %s1022_s13 = sphi %s1068_s13, %s1323_s13   ;;  %s1018_s12 = sphi %s1066_s12, %s1322_s12  }
   0xb   : > { %1306 = sst [smem:[#allocation16_spill]] %s1038_s17  ;;  %s710_s19 = sadd.s32 4294967294, %s1038_s17  }
   0xc   : > { %s41_s20 = sadd.s32 1, %s1034_s16  ;;  %s50_s21 = sadd.s32 1, %s1026_s14 }
   0xd   : > { %p43_p0 = scmp.ge.s32.totalorder %s41_s20, 2  ;;  %p57_p1 = scmp.ne.s32.totalorder %s1026_s14, %s1022_s13 }
   0xe   : > { %p58_p2 = scmp.eq.s32.totalorder %s1038_s17, 0  ;;  %p63_p3 = scmp.ne.s32.totalorder %s1022_s13, %s1018_s12 }
   0xf   : > { %s1327_s20 = smov (%p43_p0, %s41_s20), 0  ;;  %p64_p5 = scmp.eq.s32.totalorder %s1097_s18, 0 }
  0x10   : > { %1307 = sst [smem:[#allocation17_spill]] %s1327_s20  ;;  %p1109_p4 = por %p58_p2, %p57_p1 }
  0x11   : > { %s45_s23 = ssub.s32 %s1034_s16, %s1327_s20  ;;  %p145_p6 = scmp.eq.s32.totalorder %s1097_s18, 1 }
  0x12   : > { %p48_p7 = scmp.eq.s32.totalorder %s45_s23, 0  ;;  %p1117_p8 = por %p64_p5, %p63_p3 }
  0x13   : > { %p1121_p9 = por %p145_p6, %p57_p1  ;;  %p151_p10 = scmp.eq.s32.totalorder %s710_s19, 1 }
  0x14   : > { %s1126_s26 = scalar_select %p48_p7, %s1026_s14, %s50_s21  }
  0x15   : > { %p1128_p11 = por %p151_p10, %p63_p3  ;;  %p712_p12 = scmp.ge.s32.totalorder %s1038_s17, 2 }
  0x16   : > { %1311 = sst [smem:[#allocation18_spill]] %s1126_s26  ;;  %p769_p13 = scmp.lt.s32.totalorder %s1038_s17, 2 }
  0x17   : > { %s1312_s27 = scalar_select %p1128_p11, 1, 0 }
  0x18   : > { %s1135_s28 = sand.u32 1, %s1026_s14   ;;  %s714_s30 = sshll.u32 %s1034_s16, 2 }
  0x19   : > { %1313 = sst [smem:[#allocation19_spill]] %s1312_s27  ;;  %s713_s29 = sshll.u32 %s1135_s28, 2 }
  0x1a   : > { %p1141_p0 = pnand %p769_p13, %p1109_p4  ;;  %s191_s5 = sand.u32 1, %s1038_s17  }
  0x1b   : > { %s1315_s1 = sld [smem:[#allocation20_spill]]  ;;  %s195_s10 = scalar_lea.vmem [#allocation8], %s713_s29 }
  0x1c   : > { %s204_s11 = sshll.u32 %s195_s10, 4  ;;  %s192_s19 = scalar_lea.sflag [#allocation9], %s191_s5  ;;  %s205_s11 = int_to_ptr.vmem [resolvable:$true] %s204_s11 }
  0x1d   : > { %s717_s21 = sshll.u32 %s1135_s28, 3  ;;  %p720_p1 = scmp.ge.s32.totalorder %s1038_s17, 1 }
  0x1e   : > { %p232_p2 = scmp.lt.s32.totalorder %s1038_s17, 3  ;;  %s215_s22 = scalar_lea.vmem [#allocation10], %s717_s21 }
  0x1f   : > { %s224_s23 = sshll.u32 %s215_s22, 4  ;;  %s180_s10 = scalar_lea.hbm %s1295_s0, %s714_s30  ;;  %s225_s23 = int_to_ptr.vmem [resolvable:$true] %s224_s23 }
  0x20   : > { %p1154_p3 = pnand %p720_p1, %p232_p2  ;;  %s182_s5 = sshll.u32 %s180_s10, 4  ;;  %s183_s5 = int_to_ptr.hbm [resolvable:$true] %s182_s5 }
  0x21   : > { %s200_s8 = scalar_lea.hbm %s1315_s1, %s714_s30  ;;  %s175_s1 = scalar_lea.vmem [#allocation5], %s713_s29 }
  0x22   : > { %s202_s9 = sshll.u32 %s200_s8, 4  ;;  %s184_s20 = sshll.u32 %s175_s1, 4  ;;  %s203_s9 = int_to_ptr.hbm [resolvable:$true] %s202_s9  ;;  %s185_s20 = int_to_ptr.vmem [resolvable:$true] %s184_s20 }
  0x23   : > { %761 = dma.hbm_to_vmem [thread:$0]  (!%p1141_p0), %s203_s9, 64, %s205_s11, %s192_s19  }
  0x24   : > { %s172_s9 = scalar_lea.sflag [#allocation6], %s1135_s28  ;;  %s742_s11 = sshll.u32 %s1034_s16, 3 }
  0x25   : > { %758 = dma.hbm_to_vmem [thread:$0]  (!%p1141_p0), %s183_s5, 64, %s185_s20, %s172_s9  }
  0x26   : > { %s221_s26 = scalar_lea.hbm %s1297_s2, %s742_s11  ;;  %s1040_s17 = smov 64  }
  0x27   : > { %s222_s14 = sshll.u32 %s221_s26, 4  ;;  %s1041_s27 = smov 4   ;;  %s223_s14 = int_to_ptr.hbm [resolvable:$true] %s222_s14 }
  0x28   : > { %764 = dma.hbm_to_vmem [thread:$0]  (!%p1141_p0), %s223_s14, 128, %s225_s23, %s192_s19, %s1040_s17, %s1040_s17, %s1041_s27  }
  0x29   : > { %236 = sbr.rel (%p1154_p3) target bundleno = 694 (0x2b6), region = 32  ;;  %s1173_s1 = sand.u32 (!%p1154_p3), 1, %s1022_s13  }
  0x2a   : > { %s721_s20 = sshll.u32 (!%p1154_p3), %s1173_s1, 2  ;;  %s239_s28 = scalar_lea.sflag (!%p1154_p3), [#allocation6], %s1173_s1 }
  0x2b   : > { %s242_s29 = scalar_lea.vmem (!%p1154_p3), [#allocation5], %s721_s20 }
  0x2e   : > { %1005 = dma.done.wait (%p1117_p8), %s239_s28, 64  }
  0x2f   : > { %1007 = vsyncadd (%p1117_p8), %s239_s28, 4294967232  ;;  %s248_s14 = sand.u32 1, %s1097_s18   ;;  %s252_s26 = scalar_lea.vmem [#allocation8], %s721_s20 }
  0x30   : > { %s249_s17 = scalar_lea.sflag [#allocation9], %s248_s14 }
  0x31   : > { %1009 = dma.done.wait (%p1117_p8), %s249_s17, 192  }
  0x32   : > { %1011 = vsyncadd (%p1117_p8), %s249_s17, 4294967104  ;;  %vm348_vm0 = vcmask 1043456   ;;  %v305_v0 = vld [vmem:[%s252_s26] sm:$0xf]  ;;  %v306_v1 = vld [vmem:[%s242_s29] sm:$0xf] }
  0x33   : > { %307 = vxpose.xlu0.c.b16.start.end [1/1] (short) %v305_v0, 128  ;;  %v350_v2 = vsel %vm348_vm0, %v306_v1, 0  ;;  %vm323_vm1 = vcmask 64512   ;;  %v1042_v16 = vmov -1e+30   ;;  %v1043_v44 = vmov 0.0   ;;  %s723_s18 = sshll.u32 %s1173_s1, 3 }
  0x34   : > { %359 = vmatpush.bf16.msra.mxu0 %v350_v2  ;;  %745 = vmatpush.bf16.msra.mxu2 %v350_v2  ;;  %301 = vst [vmem:[#allocation2] sm:$0x1] %v1042_v16  ;;  %s262_s24 = scalar_lea.vmem [#allocation10], %s723_s18  ;;  %s724_s27 = sshll.u32 %s1173_s1, 4 }
  0x35   : > { %746 = vmatpush.bf16.msra.mxu3 %v350_v2  ;;  %302 = vst [vmem:[#allocation3] sm:$0x1] %v1043_v44  ;;  %s744_s30 = sshll.u32 %s1030_s15, 4  ;;  %s295_s4 = scalar_lea.vmem [#allocation11], %s724_s27 }
  0x36   : > { %s572_s6 = scalar_lea.hbm %s1298_s3, %s744_s30  ;;  %s573_s7 = sshll.u32 %s295_s4, 4  ;;  %s574_s7 = int_to_ptr.vmem [resolvable:$true] %s573_s7 }
  0x37   : > { %s575_s8 = sshll.u32 %s572_s6, 4  ;;  %s560_s10 = scalar_lea.sflag [#allocation7], %s1173_s1  ;;  %s576_s8 = int_to_ptr.hbm [resolvable:$true] %s575_s8 }
  0x38   : > { %s966_s5 = sshra.s32 %s576_s8, 4  ;;  %s972_s21 = scalar_lea.hbm %s1298_s3, 32  ;;  %s967_s5 = int_to_ptr.hbm [resolvable:$true] %s966_s5 }
  0x39   : > { %s968_s15 = scalar_lea.hbm %s967_s5, 16  ;;  %p973_p7 = scmp.lt.s32.totalorder %s967_s5, %s1298_s3 }
  0x3a   : > { %p969_p4 = scmp.ne.s32.totalorder %s967_s5, %s968_s15  ;;  %p974_p8 = scmp.lt.s32.totalorder %s972_s21, %s968_s15 }
  0x3b   : > { %v1221_v49 = vld [vmem:[#allocation2] sm:$0x1] }
  0x3c   : > { %p970_p5 = pnand %p969_p4, %p1121_p9  ;;  %p975_p10 = por %p974_p8, %p973_p7 }
  0x3e   : > { %p971_p6 = pneg %p970_p5 }
  0x40   : > { %p976_p13 = pnand %p975_p10, %p971_p6 }
  0xdf   : > { %v315_v3 = vpop.trf.xlu0 }
  0xe0   : > { %725 = vmatmul.msk.bf16.vlgmr.msra.gmra.mxu0 %vm323_vm1, %v315_v3 }
  0xef   : > { %v316_v4 = vpop.trf.xlu0 }
  0xf0   : > { %726 = vmatmul.msk.bf16.gmra.mxu0 %vm323_vm1, %v316_v4 }
  0xff   : > { %v317_v5 = vpop.trf.xlu0 }
 0x100   : > { %727 = vmatmul.msk.bf16.gmra.mxu0 %vm323_vm1, %v317_v5 }
 0x10f   : > { %v318_v6 = vpop.trf.xlu0 }
 0x110   : > { %728 = vmatmul.msk.bf16.vlgmr.msra.gmra.mxu2 %vm323_vm1, %v318_v6 }
 0x11f   : > { %v319_v7 = vpop.trf.xlu0 }
 0x120   : > { %729 = vmatmul.msk.bf16.gmra.mxu2 %vm323_vm1, %v319_v7 }
 0x12f   : > { %v320_v8 = vpop.trf.xlu0 }
 0x130   : > { %730 = vmatmul.msk.bf16.gmra.mxu2 %vm323_vm1, %v320_v8 }
 0x13f   : > { %v321_v9 = vpop.trf.xlu0 }
 0x140   : > { %731 = vmatmul.msk.bf16.vlgmr.msra.gmra.mxu3 %vm323_vm1, %v321_v9 }
 0x14f   : > { %v322_v10 = vpop.trf.xlu0 }
 0x150   : > { %732 = vmatmul.msk.bf16.gmra.mxu3 %vm323_vm1, %v322_v10 }
 0x15d   : > { %v361_v11 = vpop.f32.mrf.mxu0 }
 0x165   : > { %v363_v13 = vpop.f32.mrf.mxu0 }
 0x16d   : > { %v366_v15 = vpop.f32.mrf.mxu0 }
 0x175   : > { %v368_v18 = vpop.f32.mrf.mxu0 }
 0x17d   : > { %v371_v21 = vpop.f32.mrf.mxu0 }
 0x17e   : > { %v402_v28 = vmax.f32 %v361_v11, %v371_v21 }
 0x185   : > { %v373_v24 = vpop.f32.mrf.mxu0 }
 0x186   : > { %v403_v26 = vmax.f32 %v363_v13, %v373_v24 }
 0x193   : > { %v1194_v12 = vpop.f32.mrf.mxu2 }
 0x194   : > { %v404_v29 = vmax.f32 %v366_v15, %v1194_v12 }
 0x19b   : > { %v1196_v14 = vpop.f32.mrf.mxu2 }
 0x19c   : > { %v405_v30 = vmax.f32 %v368_v18, %v1196_v14 }
 0x1a3   : > { %v1198_v17 = vpop.f32.mrf.mxu2 }
 0x1a4   : > { %v406_v32 = vmax.f32 %v402_v28, %v1198_v17 }
 0x1ab   : > { %v1200_v19 = vpop.f32.mrf.mxu2 }
 0x1ac   : > { %v407_v31 = vmax.f32 %v403_v26, %v1200_v19 }
 0x1b3   : > { %v1206_v23 = vpop.f32.mrf.mxu2 }
 0x1b4   : > { %v408_v33 = vmax.f32 %v404_v29, %v1206_v23 }
 0x1bb   : > { %v1210_v27 = vpop.f32.mrf.mxu2 }
 0x1bc   : > { %v409_v34 = vmax.f32 %v405_v30, %v1210_v27 }
 0x1c3   : > { %v1202_v20 = vpop.f32.mrf.mxu3 }
 0x1c4   : > { %v410_v37 = vmax.f32 %v406_v32, %v1202_v20 }
 0x1cb   : > { %v1204_v22 = vpop.f32.mrf.mxu3 }
 0x1cc   : > { %v411_v35 = vmax.f32 %v407_v31, %v1204_v22 }
 0x1ce   : > { %v414_v40 = vmax.f32 %v410_v37, %v411_v35 }
 0x1d3   : > { %v1208_v25 = vpop.f32.mrf.mxu3 }
 0x1d4   : > { %v412_v38 = vmax.f32 %v408_v33, %v1208_v25 }
 0x1db   : > { %v398_v36 = vpop.f32.mrf.mxu3 }
 0x1dc   : > { %v413_v39 = vmax.f32 %v409_v34, %v398_v36 }
 0x1de   : > { %v415_v41 = vmax.f32 %v412_v38, %v413_v39 }
 0x1e0   : > { %v416_v42 = vmax.f32 %v414_v40, %v415_v41 }
 0x1e2   : > { %v417_v43 = vrot.slane %v416_v42, 4 }
 0x1e4   : > { %v418_v45 = vmax.f32 %v416_v42, %v417_v43 }
 0x1e6   : > { %v419_v46 = vrot.slane %v418_v45, 2 }
 0x1e8   : > { %v420_v47 = vmax.f32 %v418_v45, %v419_v46 }
 0x1ea   : > { %v421_v48 = vrot.slane %v420_v47, 1 }
 0x1ec   : > { %v422_v50 = vmax.f32 %v420_v47, %v421_v48 }
 0x1ee   : > { %v1224_v51 = vmax.f32 %v1221_v49, %v422_v50 }
 0x1f0   : > { %v428_v52 = vperm.slane %v1224_v51, 0  ;;  %544 = vst [vmem:[#allocation2] sm:$0x1] %v1224_v51 }
 0x1f2   : > { %v430_v53 = vsub.f32 %v361_v11, %v428_v52  ;;  %v431_v54 = vsub.f32 %v363_v13, %v428_v52  ;;  %v432_v55 = vsub.f32 %v366_v15, %v428_v52  ;;  %v433_v56 = vsub.f32 %v368_v18, %v428_v52 }
 0x1f3   : > { %v434_v59 = vsub.f32 %v371_v21, %v428_v52  ;;  %v435_v61 = vsub.f32 %v373_v24, %v428_v52  ;;  %v445_v63 = vsub.f32 %v398_v36, %v428_v52  ;;  %v436_v0 = vsub.f32 %v1194_v12, %v428_v52 }
 0x1f4   : > { %v446_v57 = vmul.f32 1.442695, %v430_v53  ;;  %v448_v58 = vmul.f32 1.442695, %v431_v54  ;;  %v450_v60 = vmul.f32 1.442695, %v432_v55  ;;  %v437_v2 = vsub.f32 %v1196_v14, %v428_v52 }
 0x1f5   : > { %v452_v62 = vmul.f32 1.442695, %v433_v56  ;;  %v454_v1 = vmul.f32 1.442695, %v434_v59  ;;  %v438_v3 = vsub.f32 %v1198_v17, %v428_v52  ;;  %v456_v4 = vmul.f32 1.442695, %v435_v61 }
 0x1f6   : > { %826 = vpow2.f32 %v446_v57  ;;  %v476_v6 = vmul.f32 1.442695, %v445_v63  ;;  %v444_v7 = vsub.f32 %v1208_v25, %v428_v52  ;;  %v442_v9 = vsub.f32 %v1202_v20, %v428_v52 }
 0x1f7   : > { %828 = vpow2.f32 %v448_v58  ;;  %v458_v10 = vmul.f32 1.442695, %v436_v0  ;;  %v443_v11 = vsub.f32 %v1204_v22, %v428_v52  ;;  %v460_v12 = vmul.f32 1.442695, %v437_v2 }
 0x1f8   : > { %830 = vpow2.f32 %v450_v60  ;;  %v439_v15 = vsub.f32 %v1200_v19, %v428_v52  ;;  %v462_v16 = vmul.f32 1.442695, %v438_v3  ;;  %v474_v17 = vmul.f32 1.442695, %v444_v7 }
 0x1f9   : > { %832 = vpow2.f32 %v452_v62  ;;  %v440_v20 = vsub.f32 %v1206_v23, %v428_v52  ;;  %v470_v22 = vmul.f32 1.442695, %v442_v9  ;;  %v441_v24 = vsub.f32 %v1210_v27, %v428_v52  ;;  %v743_v9 = vld [vmem:[%s262_s24] sm:$0xff] }
 0x1fa   : > { %834 = vpow2.f32 %v454_v1  ;;  %v472_v25 = vmul.f32 1.442695, %v443_v11  ;;  %v464_v19 = vmul.f32 1.442695, %v439_v15  ;;  %v424_v54 = vsub.f32 %v1221_v49, %v1224_v51  ;;  %v478_v51 = vld [vmem:[#allocation3] sm:$0x1] }
 0x1fb   : > { %836 = vpow2.f32 %v456_v4  ;;  %v466_v31 = vmul.f32 1.442695, %v440_v20  ;;  %v468_v33 = vmul.f32 1.442695, %v441_v24 }
 0x1fc   : > { %v1231_v5 = vpop.eup %826  ;;  %838 = vpow2.f32 %v476_v6  ;;  %v425_v58 = vmul.f32 1.442695, %v424_v54 }
 0x1fd   : > { %v1234_v8 = vpop.eup %828  ;;  %840 = vpow2.f32 %v458_v10 }
 0x1fe   : > { %v480_v13 = vadd.f32 %v1234_v8, %v1231_v5  ;;  %v1240_v14 = vpop.eup %830  ;;  %842 = vpow2.f32 %v460_v12  ;;  %v512_v7 = vpack.c.bf16 %v1234_v8, %v1231_v5 }
 0x1ff   : > { %v1244_v21 = vpop.eup %832  ;;  %844 = vpow2.f32 %v462_v16 }
 0x200   : > { %v481_v18 = vadd.f32 %v1240_v14, %v480_v13  ;;  %v835_v28 = vpop.eup %834  ;;  %846 = vpow2.f32 %v474_v17  ;;  %v513_v49 = vpack.c.bf16 %v1244_v21, %v1240_v14 }
 0x201   : > { %v837_v30 = vpop.eup %836  ;;  %848 = vpow2.f32 %v470_v22 }
 0x202   : > { %v482_v26 = vadd.f32 %v1244_v21, %v481_v18  ;;  %v839_v32 = vpop.eup %838  ;;  %850 = vpow2.f32 %v472_v25  ;;  %v514_v63 = vpack.c.bf16 %v837_v30, %v835_v28 }
 0x203   : > { %v841_v34 = vpop.eup %840  ;;  %852 = vpow2.f32 %v464_v19 }
 0x204   : > { %v483_v29 = vadd.f32 %v835_v28, %v482_v26  ;;  %v843_v35 = vpop.eup %842  ;;  %854 = vpow2.f32 %v466_v31 }
 0x205   : > { %v845_v36 = vpop.eup %844  ;;  %856 = vpow2.f32 %v468_v33  ;;  %v515_v60 = vpack.c.bf16 %v843_v35, %v841_v34 }
 0x206   : > { %v484_v23 = vadd.f32 %v837_v30, %v483_v29  ;;  %v847_v37 = vpop.eup %846  ;;  %858 = vpow2.f32 %v425_v58 }
 0x207   : > { %v849_v39 = vpop.eup %848  ;;  %v519_v40 = vpack.c.bf16 %v839_v32, %v847_v37 }
 0x208   : > { %v485_v27 = vadd.f32 %v841_v34, %v484_v23  ;;  %v851_v41 = vpop.eup %850 }
 0x209   : > { %v853_v43 = vpop.eup %852  ;;  %526 = vmatpush.bf16.msra.mxu1 %v519_v40  ;;  %v518_v46 = vpack.c.bf16 %v851_v41, %v849_v39 }
 0x20a   : > { %v486_v38 = vadd.f32 %v843_v35, %v485_v27  ;;  %v855_v45 = vpop.eup %854  ;;  %v516_v56 = vpack.c.bf16 %v853_v43, %v845_v36 }
 0x20b   : > { %v857_v47 = vpop.eup %856 }
 0x20c   : > { %v487_v42 = vadd.f32 %v845_v36, %v486_v38  ;;  %v517_v52 = vpack.c.bf16 %v857_v47, %v855_v45  ;;  %v859_v2 = vpop.eup %858 }
 0x20d   : > { %527 = vmatpush.bf16.msra.mxu1 %v518_v46  ;;  %v479_v6 = vmul.f32 %v859_v2, %v478_v51  ;;  %v506_v12 = vperm.slane %v859_v2, 0 }
 0x20e   : > { %v488_v44 = vadd.f32 %v853_v43, %v487_v42 }
 0x20f   : > { %v508_v14 = vmul.f32 0.0, %v506_v12 }
 0x210   : > { %v489_v48 = vadd.f32 %v855_v45, %v488_v44 }
 0x211   : > { %528 = vmatpush.bf16.msra.mxu1 %v517_v52 }
 0x212   : > { %v490_v50 = vadd.f32 %v857_v47, %v489_v48 }
 0x214   : > { %v491_v53 = vadd.f32 %v849_v39, %v490_v50 }
 0x215   : > { %529 = vmatpush.bf16.msra.mxu1 %v516_v56 }
 0x216   : > { %v492_v55 = vadd.f32 %v851_v41, %v491_v53 }
 0x218   : > { %v493_v57 = vadd.f32 %v847_v37, %v492_v55 }
 0x219   : > { %530 = vmatpush.bf16.msra.mxu1 %v515_v60 }
 0x21a   : > { %v494_v59 = vadd.f32 %v839_v32, %v493_v57 }
 0x21c   : > { %v495_v61 = vrot.slane %v494_v59, 4 }
 0x21d   : > { %531 = vmatpush.bf16.msra.mxu1 %v514_v63 }
 0x21e   : > { %v496_v62 = vadd.f32 %v495_v61, %v494_v59 }
 0x220   : > { %v497_v0 = vrot.slane %v496_v62, 2 }
 0x221   : > { %532 = vmatpush.bf16.msra.mxu1 %v513_v49 }
 0x222   : > { %v498_v1 = vadd.f32 %v497_v0, %v496_v62 }
 0x224   : > { %v499_v3 = vrot.slane %v498_v1, 1 }
 0x225   : > { %533 = vmatpush.bf16.msra.mxu1 %v512_v7 }
 0x226   : > { %v500_v4 = vadd.f32 %v499_v3, %v498_v1 }
 0x228   : > { %v501_v10 = vadd.f32 %v500_v4, %v479_v6  ;;  %534 = vmatmul.bf16.vlgmr.msra.gmra.mxu1 %v743_v9 }
 0x22a   : > { %502 = vst [vmem:[#allocation3] sm:$0x1] %v501_v10 }
 0x231   : > { %v550_v11 = vld [vmem:[#allocation3] sm:$0x1] }
 0x232   : > { %860 = vrcp.f32 %v550_v11 }
 0x238   : > { %v861_v13 = vpop.eup %860 }
 0x239   : > { %v553_v17 = vperm.slane %v861_v13, 0 }
 0x2a5   : > { %v535_v15 = vpop.f32.mrf.mxu1 }
 0x2a6   : > { %v540_v16 = vadd.f32 %v535_v15, %v508_v14 }
 0x2a8   : > { %v555_v18 = vmul.f32 %v553_v17, %v540_v16 }
 0x2aa   : > { %557 = vst [vmem:[%s295_s4] sm:$0xff] %v555_v18 }
 0x2ad   : > { %v537_v5 = vpop.f32.mrf.mxu1 }
 0x2ae   : > { %v541_v8 = vadd.f32 %v537_v5, %v508_v14 }
 0x2b0   : > { %v556_v21 = vmul.f32 %v553_v17, %v541_v8 }
 0x2b2   : > { %558 = vst [vmem:[%s295_s4 + $0x8] sm:$0xff] %v556_v21 }
 0x2b3   : > { %979 = shalt.err (!%p976_p13)
}
 0x2b4   : > { %s1044_s1 = smov 128   ;;  %s1045_s28 = smov 8  }
 0x2b5   : > { %753 = dma.vmem_to_hbm [thread:$0]  (%p1121_p9), %s574_s7, 256, %s576_s8, %s560_s10, %s1044_s1, %s1044_s1, %s1045_s28  }
 0x2b6 PF: > { %s1318_s14 = sld [smem:[#allocation16_spill]]  ;;  %s590_s17 = sand.u32 1, %s1018_s12  }
 0x2b7   : > { %p766_p0 = pnand %p712_p12, %p1128_p11  ;;  %s591_s26 = scalar_lea.sflag [#allocation7], %s590_s17 }
 0x2b9   : > { %p767_p1 = pneg %p766_p0 }
 0x2bb   : > { %1013 = dma.done.wait (%p767_p1), %s591_s26, 256  }
 0x2bc   : > { %1015 = vsyncadd (%p767_p1), %s591_s26, 4294967040  ;;  %s22_s17 = sadd.s32 1, %s1318_s14   ;;  %s1319_s18 = sld [smem:[#allocation15_spill]] }
 0x2bd   : > { %p19_p2 = scmp.ge.s32.totalorder %s22_s17, 4   ;;  %s1320_s14 = sld [smem:[#allocation18_spill]] }
 0x2be   : > { %s1321_s25 = sld [smem:[#allocation17_spill]]  ;;  %s1322_s12 = smov %s1022_s13 }
 0x2bf   : > { %s1324_s15 = smov %s1034_s16 }
 0x2c0   :  { %21 = sbr.rel (!%p19_p2) target bundleno = 10 (0xa), region = 109 }
 0x2c2   : > { %s1323_s13 = smov %s1319_s18 }
 0x2c4   : > { %s1325_s16 = smov %s1321_s25 }
 0x2c5   :  { %597 = vsyncpa [#allocation6], 1 }
 0x2c6   :  { %599 = vsyncpa [#allocation6 + $0x1], 1 }
 0x2c7   :  { %600 = vsyncpa [#allocation9], 1 }
 0x2c8   :  { %602 = vsyncpa [#allocation9 + $0x1], 1 }
 0x2c9   :  { %603 = vsyncpa [#allocation7], 1 }
 0x2ca   :  { %605 = vsyncpa [#allocation7 + $0x1], 1 }

</bundles_post_ra>
